<compile_context>
chip_gen: v7x
topology: tpu7x:2x2x1
jax: 0.10.0
libtpu: 0.0.40
codegen_flags: <defaults>
</compile_context>

<pallas_src>
import functools

import jax
import jax.numpy as jnp
from jax.experimental import pallas as pl
from jax.experimental.pallas import tpu as pltpu

_KP = 8      # padded input features: 4 feats + 1 bias-ones row + 3 zero rows
_HP = 128    # padded hidden width:   50 real + 1 bias-ones hidden + 77 zero


def _round_up(n, m):
    return ((n + m - 1) // m) * m


def _mlp_kernel(xt_ref, p_ref, o_ref):
    ap = o_ref.shape[0]
    xt = xt_ref[...]                        # (8, tm)   bf16, row 4 == 1.0
    w1t = p_ref[0:_HP, 0:_KP]               # (128, 8)  bf16 (b1 folded, col 4)
    w2t = p_ref[_HP:_HP + ap, :]            # (AP, 128) bf16 (b2 folded, col 50)
    h = jnp.dot(w1t, xt, preferred_element_type=jnp.float32)    # (128, tm) f32
    h = jnp.maximum(h, 0.0).astype(xt.dtype)                    # ReLU -> bf16
    y = jnp.dot(w2t, h, preferred_element_type=jnp.float32)     # (AP, tm) f32
    o_ref[...] = y.astype(o_ref.dtype)      # lane-dense, unmasked stores


def pack_params(w1, b1, w2, b2, dtype=jnp.bfloat16):
    """Pack (4,50)/(50,)/(50,A)/(A,) params into one (128+AP, 128) slab.

    Call ONCE per parameter update (not per forward); pass the slab to
    net_forward.  Biases are folded into the weight blocks (see header).
    """
    K, H = w1.shape
    A = w2.shape[-1]
    assert K + 1 <= _KP and H + 1 <= _HP and A <= _HP
    ap = _round_up(max(A, 8), 8)
    slab = jnp.zeros((_HP + ap, _HP), jnp.float32)
    # W1^T block: rows = hidden units, cols = input features (+ bias col K).
    slab = slab.at[0:H, 0:K].set(jnp.asarray(w1, jnp.float32).T)
    slab = slab.at[0:H, K].set(jnp.asarray(b1, jnp.float32).reshape(-1))
    slab = slab.at[H, K].set(1.0)           # hidden unit H == relu(1) == 1
    # W2^T block: rows = actions, cols = hidden units (+ bias col H).
    slab = slab.at[_HP:_HP + A, 0:H].set(jnp.asarray(w2, jnp.float32).T)
    slab = slab.at[_HP:_HP + A, H].set(jnp.asarray(b2, jnp.float32).reshape(-1))
    return slab.astype(dtype)


def net_forward(x, param_slab, *, n_action, block_b=2048):
    """x: (B, 4) f32/bf16.  param_slab: from pack_params.  -> (B, n_action) f32."""
    B, K = x.shape
    ap = param_slab.shape[0] - _HP
    assert n_action <= ap

    # Batch lives on the lane axis -> tile must be a multiple of 128 lanes.
    bp128 = _round_up(B, 128)
    if bp128 >= 2 * block_b:
        tm = block_b
    elif bp128 >= 256:
        tm = _round_up(bp128 // 2, 128)     # >=2 grid steps: feeds both v7x TCs
    else:
        tm = 128
    BP = _round_up(B, tm)

    # Build x^T (8, BP) in bf16 with a constant-1 row for the fc1 bias.
    # (Tiny: 16 B/row; the big HBM terms — output lanes / slice-back — are gone.)
    xT = jnp.pad(x.astype(jnp.bfloat16).T, ((0, 0), (0, BP - B)))     # (4, BP)
    xt = jnp.concatenate(
        [xT,
         jnp.ones((1, BP), jnp.bfloat16),
         jnp.zeros((_KP - K - 1, BP), jnp.bfloat16)], axis=0)         # (8, BP)

    out_t = pl.pallas_call(
        _mlp_kernel,
        out_shape=jax.ShapeDtypeStruct((ap, BP), jnp.float32),
        grid=(BP // tm,),
        in_specs=[
            pl.BlockSpec((_KP, tm), lambda i: (0, i)),
            # index_map ignores the grid index -> slab loaded once, resident.
            pl.BlockSpec(param_slab.shape, lambda i: (0, 0)),
        ],
        out_specs=pl.BlockSpec((ap, tm), lambda i: (0, i)),
        compiler_params=pltpu.CompilerParams(
            dimension_semantics=("parallel",)),
    )(xt, param_slab)

    # (AP, BP) -> (B, n_action): <=8-row slice + transpose, negligible bytes.
    return out_t[:n_action, :B].T


def init_params(key, n_action):
    """Deterministic init mimicking nn.Linear's uniform(-1/sqrt(fan_in), +)."""
    k1, k2, k3, k4 = jax.random.split(key, 4)
    lim1 = 1.0 / jnp.sqrt(4.0)
    lim2 = 1.0 / jnp.sqrt(50.0)
    w1 = jax.random.uniform(k1, (4, 50), jnp.float32, -lim1, lim1)
    b1 = jax.random.uniform(k2, (1, 50), jnp.float32, -lim1, lim1)
    w2 = jax.random.uniform(k3, (50, n_action), jnp.float32, -lim2, lim2)
    b2 = jax.random.uniform(k4, (1, n_action), jnp.float32, -lim2, lim2)
    return w1, b1, w2, b2


if __name__ == "__main__":
    n_action = 2
    batch = 8

    key = jax.random.PRNGKey(0)
    kx, kp = jax.random.split(key)
    x = jax.random.normal(kx, (batch, 4), jnp.float32)
    w1, b1, w2, b2 = init_params(kp, n_action)

    # Pack parameters once (hoisted off the per-forward path).
    slab = pack_params(w1, b1, w2, b2)

    fwd = jax.jit(functools.partial(net_forward, n_action=n_action))
    out = jax.block_until_ready(fwd(x, slab))

    # Pure-JAX f32 reference of the same forward pass (kernel uses bf16 inputs
    # with f32 accumulation, so allow a small tolerance).
    ref = jnp.maximum(x @ w1 + b1, 0.0) @ w2 + b2
    assert out.shape == (batch, n_action)
    assert jnp.allclose(out, ref, atol=5e-2, rtol=5e-2), (
        float(jnp.max(jnp.abs(out - ref))))

    print("KERNEL_OK")
</pallas_src>

<mosaic_0001>
module attributes {stable_mosaic.version = 11 : i64} {
  func.func @_mlp_kernel(%arg0: i32, %arg1: memref<8x128xbf16, #tpu.memory_space<vmem>>, %arg2: memref<136x128xbf16, #tpu.memory_space<vmem>>, %arg3: memref<8x128xf32, #tpu.memory_space<vmem>>) attributes {dimension_semantics = [#tpu.dimension_semantics<parallel>], iteration_bounds = array<i64: 1>, scalar_prefetch = 0 : i64, scratch_operands = 0 : i64, tpu.core_type = #tpu.core_type<tc>, window_params = [{transform_indices = @transform_0, window_bounds = array<i64: 8, 128>}, {pipeline_mode = #tpu.pipeline_mode<synchronous>, transform_indices = @transform_1, window_bounds = array<i64: 136, 128>}, {transform_indices = @transform_2, window_bounds = array<i64: 8, 128>}]} {
    %c0 = arith.constant 0 : index
    %c0_0 = arith.constant 0 : index
    %0 = vector.load %arg1[%c0, %c0_0] : memref<8x128xbf16, #tpu.memory_space<vmem>>, vector<8x128xbf16>
    %c0_1 = arith.constant 0 : index
    %c0_2 = arith.constant 0 : index
    %1 = vector.load %arg2[%c0_1, %c0_2] : memref<136x128xbf16, #tpu.memory_space<vmem>>, vector<128x8xbf16>
    %c128 = arith.constant 128 : index
    %c0_3 = arith.constant 0 : index
    %2 = vector.load %arg2[%c128, %c0_3] : memref<136x128xbf16, #tpu.memory_space<vmem>>, vector<8x128xbf16>
    %cst = arith.constant dense<0.000000e+00> : vector<128x128xf32>
    %3 = tpu.matmul %1, %0, %cst {dimension_numbers = #tpu.dot_dimension_numbers<[1], [0], [0], [1], [0, 0, 1, 1], [], []>} : vector<128x8xbf16>, vector<8x128xbf16>, vector<128x128xf32> -> vector<128x128xf32>
    %cst_4 = arith.constant 0.000000e+00 : f32
    %4 = vector.broadcast %cst_4 : f32 to vector<128x128xf32>
    %5 = arith.maximumf %3, %4 : vector<128x128xf32>
    %6 = arith.truncf %5 : vector<128x128xf32> to vector<128x128xbf16>
    %cst_5 = arith.constant dense<0.000000e+00> : vector<8x128xf32>
    %7 = tpu.matmul %2, %6, %cst_5 {dimension_numbers = #tpu.dot_dimension_numbers<[1], [0], [0], [1], [0, 0, 1, 1], [], []>} : vector<8x128xbf16>, vector<128x128xbf16>, vector<8x128xf32> -> vector<8x128xf32>
    %c0_6 = arith.constant 0 : index
    %c0_7 = arith.constant 0 : index
    %8 = vector.load %arg3[%c0_6, %c0_7] : memref<8x128xf32, #tpu.memory_space<vmem>>, vector<8x128xf32>
    tpu.vector_store %arg3[%c0_6, %c0_7], %7 {strides = array<i32>} : memref<8x128xf32, #tpu.memory_space<vmem>>, vector<8x128xf32>,
    return
  }
  func.func @transform_0(%arg0: i32) -> (i32, i32) {
    %c0_i32 = arith.constant 0 : i32
    %c0_i32_0 = arith.constant 0 : i32
    return %c0_i32, %arg0 : i32, i32
  }
  func.func @transform_1(%arg0: i32) -> (i32, i32) {
    %c0_i32 = arith.constant 0 : i32
    %c0_i32_0 = arith.constant 0 : i32
    %c0_i32_1 = arith.constant 0 : i32
    return %c0_i32, %c0_i32_0 : i32, i32
  }
  func.func @transform_2(%arg0: i32) -> (i32, i32) {
    %c0_i32 = arith.constant 0 : i32
    %c0_i32_0 = arith.constant 0 : i32
    return %c0_i32, %arg0 : i32, i32
  }
}

</mosaic_0001>

<bundles_post_ra>
// kernel: net_forward.1
= control target key start
LH: loop header
LB: loop body
LE: loop exit
PB: predicated region body
PF: predicated region fallthrough
CT: control target
= control target key end

     0   :  { %7 = vsyncpa [#allocation3], 0  ;;  %s390_s9 = smov [#allocation2]   ;;  %s436_s0 = inlined_call_operand.vmem [shape: bf16[8,128], index: 0, kind: input, shape index: {}]   ;;  %s437_s1 = inlined_call_operand.hbm [shape: bf16[136,128], index: 1, kind: input, shape index: {}]   ;;  %s438_s2 = inlined_call_operand.vmem [shape: f32[8,128], index: 2, kind: output, shape index: {}]  }
   0x1   :  { %s15_s10 = sshll.u32 %s390_s9, 4  ;;  %s366_s13 = scalar_lea.hbm %s437_s1, 1088  ;;  %s16_s10 = int_to_ptr.vmem [resolvable:$true] %s15_s10 }
   0x2   :  { %p367_p0 = scmp.ne.s32.totalorder %s437_s1, %s366_s13  ;;  %p370_p1 = scmp.lt.u32.totalorder %s366_s13, %s437_s1 }
   0x4   :  { %p372_p2 = pnand %p370_p1, %p367_p0 }
   0x6   :  { %375 = shalt.err (!%p372_p2)
}
   0x7   :  { %s376_s18 = scalar_lea.vmem %s16_s10, 1088  ;;  %p381_p4 = scmp.lt.s32.totalorder %s16_s10, %s16_s10 }
   0x8   :  { %p377_p3 = scmp.ne.s32.totalorder %s16_s10, %s376_s18  ;;  %p382_p5 = scmp.lt.s32.totalorder %s376_s18, %s376_s18 }
   0xa   :  { %p383_p6 = por %p382_p5, %p381_p4 }
   0xc   :  { %p384_p7 = pnand %p383_p6, %p377_p3 }
   0xe   :  { %387 = shalt.err (!%p384_p7)
}
   0xf   :  { %s391_s19 = smov 64   ;;  %s392_s20 = smov 4  }
  0x10   :  { %21 = dma.hbm_to_vmem [thread:$0]  %s437_s1, 1088, %s16_s10, [#allocation3], %s391_s19, %s391_s19, %s392_s20  }
  0x11   :  { %388 = dma.done.wait [#allocation3], 1088  }
  0x12   :  { %389 = vsyncadd [#allocation3], 4294966208  ;;  %vm109_vm0 = vcmask 1043456   ;;  %vm84_vm1 = vcmask 64512   ;;  %v26_v0 = vld [vmem:[%s436_s0] sm:$0xf] }
  0x13   :  { %352 = vmatprep.subr.msk.bf16.mxu0 %vm109_vm0, %v26_v0  ;;  %v111_v1 = vsel %vm109_vm0, %v26_v0, 0  ;;  %v358_v2 = vld [vmem:[#allocation2] sm:$0xff]   ;;  %v359_v3 = vld [vmem:[#allocation2 + $0x8] sm:$0xff]   ;;  %v360_v4 = vld [vmem:[#allocation2 + $0x10] sm:$0xff]   ;;  %v393_v10 = vmov 0.0   ;;  %vm394_vm2 = vmmov 0  }
  0x14   :  { %315 = vmatpush3.bf16.msra.mxu0 %v111_v1  ;;  %316 = vmatprep.mubr.msk.bf16.mxu0 %vm84_vm1, %v358_v2  ;;  %v361_v5 = vld [vmem:[#allocation2 + $0x18] sm:$0xff]   ;;  %v362_v6 = vld [vmem:[#allocation2 + $0x20] sm:$0xff]   ;;  %v363_v7 = vld [vmem:[#allocation2 + $0x28] sm:$0xff]  }
  0x15   :  { %v364_v8 = vld [vmem:[#allocation2 + $0x30] sm:$0xff]   ;;  %v365_v9 = vld [vmem:[#allocation2 + $0x38] sm:$0xff]   ;;  %332 = vmatprep.subr.bf16.mxu1 %v393_v10  ;;  %348 = vmatprep.mubr.msk.bf16.mxu1 %vm394_vm2, %v393_v10  ;;  %v43_v51 = vld [vmem:[#allocation2 + $0x40] sm:$0xf] }
  0x17   :  { %317 = vmatmul.mubr.msk.bf16.vlgmr.msra.gmra.mrb[0].mxu0 %vm84_vm1, %v359_v3 }
  0x18   :  { %320 = vmatprep.mubr.msk.bf16.mxu0 %vm84_vm1, %v360_v4 }
  0x1f   :  { %321 = vmatmul.mubr.msk.bf16.gmra.mrb[4].mxu0 %vm84_vm1, %v361_v5 }
  0x20   :  { %324 = vmatprep.mubr.msk.bf16.mxu0 %vm84_vm1, %v362_v6 }
  0x27   :  { %325 = vmatmul.mubr.msk.bf16.gmra.mrb[8].mxu0 %vm84_vm1, %v363_v7 }
  0x28   :  { %328 = vmatprep.mubr.msk.bf16.mxu0 %vm84_vm1, %v364_v8 }
  0x2f   :  { %329 = vmatmul.mubr.msk.bf16.gmra.mrb[12].mxu0 %vm84_vm1, %v365_v9 }
  0xea   :  { %v318_v11 = vpop.f32.mrb[0].mxu0 }
  0xeb   :  { %v147_v12 = vpop.f32.mrb[1].mxu0  ;;  %v212_v14 = vmax.f32 %v318_v11, 0.0 }
  0xec   :  { %v319_v13 = vpop.f32.mrb[2].mxu0  ;;  %v210_v17 = vmax.f32 %v147_v12, 0.0 }
  0xed   :  { %v213_v15 = vmax.f32 %v319_v13, 0.0  ;;  %v150_v16 = vpop.f32.mrb[3].mxu0 }
  0xee   :  { %v211_v18 = vmax.f32 %v150_v16, 0.0 }
  0xef   :  { %v227_v19 = vpack.c.bf16 %v213_v15, %v212_v14 }
  0xf0   :  { %v226_v20 = vpack.c.bf16 %v211_v18, %v210_v17 }
  0xf2   :  { %v322_v21 = vpop.f32.mrb[4].mxu0  ;;  %333 = vmatpush3.bf16.msra.mxu1 %v226_v20 }
  0xf3   :  { %v163_v22 = vpop.f32.mrb[5].mxu0  ;;  %334 = vmatprep.subr.bf16.mxu1 %v393_v10  ;;  %v216_v24 = vmax.f32 %v322_v21, 0.0 }
  0xf4   :  { %v323_v23 = vpop.f32.mrb[6].mxu0  ;;  %v214_v27 = vmax.f32 %v163_v22, 0.0 }
  0xf5   :  { %v217_v25 = vmax.f32 %v323_v23, 0.0  ;;  %v166_v26 = vpop.f32.mrb[7].mxu0 }
  0xf6   :  { %v215_v28 = vmax.f32 %v166_v26, 0.0  ;;  %335 = vmatpush3.bf16.msra.mxu1 %v227_v19 }
  0xf7   :  { %v229_v29 = vpack.c.bf16 %v217_v25, %v216_v24  ;;  %336 = vmatprep.subr.bf16.mxu1 %v393_v10 }
  0xf8   :  { %v228_v30 = vpack.c.bf16 %v215_v28, %v214_v27 }
  0xfa   :  { %v326_v31 = vpop.f32.mrb[8].mxu0  ;;  %337 = vmatpush3.bf16.msra.mxu1 %v228_v30 }
  0xfb   :  { %v179_v32 = vpop.f32.mrb[9].mxu0  ;;  %338 = vmatprep.subr.bf16.mxu1 %v393_v10  ;;  %v220_v34 = vmax.f32 %v326_v31, 0.0 }
  0xfc   :  { %v327_v33 = vpop.f32.mrb[10].mxu0  ;;  %v218_v37 = vmax.f32 %v179_v32, 0.0 }
  0xfd   :  { %v221_v35 = vmax.f32 %v327_v33, 0.0  ;;  %v182_v36 = vpop.f32.mrb[11].mxu0 }
  0xfe   :  { %v219_v38 = vmax.f32 %v182_v36, 0.0  ;;  %339 = vmatpush3.bf16.msra.mxu1 %v229_v29 }
  0xff   :  { %v231_v39 = vpack.c.bf16 %v221_v35, %v220_v34  ;;  %340 = vmatprep.subr.bf16.mxu1 %v393_v10 }
 0x100   :  { %v230_v40 = vpack.c.bf16 %v219_v38, %v218_v37 }
 0x102   :  { %v330_v41 = vpop.f32.mrb[12].mxu0  ;;  %341 = vmatpush3.bf16.msra.mxu1 %v230_v40 }
 0x103   :  { %v195_v42 = vpop.f32.mrb[13].mxu0  ;;  %342 = vmatprep.subr.bf16.mxu1 %v393_v10  ;;  %v224_v44 = vmax.f32 %v330_v41, 0.0 }
 0x104   :  { %v331_v43 = vpop.f32.mrb[14].mxu0  ;;  %v222_v47 = vmax.f32 %v195_v42, 0.0 }
 0x105   :  { %v225_v45 = vmax.f32 %v331_v43, 0.0  ;;  %v198_v46 = vpop.f32.mrb[15].mxu0 }
 0x106   :  { %v223_v48 = vmax.f32 %v198_v46, 0.0  ;;  %343 = vmatpush3.bf16.msra.mxu1 %v231_v39 }
 0x107   :  { %v233_v49 = vpack.c.bf16 %v225_v45, %v224_v44  ;;  %344 = vmatprep.subr.bf16.mxu1 %v393_v10 }
 0x108   :  { %v232_v50 = vpack.c.bf16 %v223_v48, %v222_v47 }
 0x10a   :  { %345 = vmatpush3.bf16.msra.mxu1 %v232_v50 }
 0x10b   :  { %346 = vmatprep.subr.bf16.mxu1 %v393_v10 }
 0x10e   :  { %347 = vmatpush3.bf16.msra.mxu1 %v233_v49 }
 0x111   :  { %349 = vmatmul.mubr.bf16.vlgmr.msra.gmra.mrb[0].mxu1 %v43_v51 }
 0x1e4   :  { %v268_v52 = vpop.f32.mrb[0].mxu1 }
 0x1e5   :  { %274 = vst [vmem:[%s438_s2] sm:$0xff] %v268_v52  ;;  %v350_v53 = vpop.f32.mrb[1].mxu1 }
 0x1e6   :  { %v271_v54 = vpop.f32.mrb[2].mxu1 }
 0x1e7   :  { %v351_v55 = vpop.f32.mrb[3].mxu1 }
 0x1e8   :  { %279 = vsyncpa [#allocation3], 1 }

</bundles_post_ra>
